<compile_context>
chip_gen: v5e
topology: v5e:2x2
jax: 0.10.0
libtpu: 0.0.40
codegen_flags: <defaults>
</compile_context>

<pallas_src>
import jax
import jax.numpy as jnp
from jax.experimental import pallas as pl
from jax.experimental.pallas import tpu as pltpu

_LANE = 128
# Biggest single block (per operand) we keep resident.  With double-buffered
# input + output blocks the pipelined footprint is ~4x this (~8 MiB), which
# fits v7x's 32 MiB scoped-VMEM default with headroom (and trivially v5e/v6e).
_BLOCK_BYTES_BUDGET = 2 * 1024 * 1024
_VMEM_LIMIT_BYTES = 32 * 1024 * 1024


# ---------------------------------------------------------------------------
# Kernels
# ---------------------------------------------------------------------------
def _center_single_block_kernel(x_ref, o_ref):
    """Whole array in one VMEM block: global mean + subtract in one pass."""
    x = x_ref[...].astype(jnp.float32)               # f32 math (v5e has no bf16 VPU)
    mean = jnp.sum(x) * jnp.float32(1.0 / x.size)    # 1/N is a trace-time constant
    o_ref[...] = (x - mean).astype(o_ref.dtype)


def _tile_sum_kernel(x_ref, sum_ref):
    """Pass 1 (tiled path): accumulate the global f32 sum into an SMEM scalar."""
    @pl.when(pl.program_id(0) == 0)
    def _init():
        sum_ref[0] = jnp.float32(0.0)

    sum_ref[0] += jnp.sum(x_ref[...].astype(jnp.float32))


def _tile_center_kernel(mean_ref, x_ref, o_ref):
    """Pass 2 (tiled path): subtract the global mean (scalar in SMEM) per tile."""
    mean = mean_ref[0]
    o_ref[...] = (x_ref[...].astype(jnp.float32) - mean).astype(o_ref.dtype)


# ---------------------------------------------------------------------------
# Wrapper helpers
# ---------------------------------------------------------------------------
def _pick_cols(n: int):
    """Widest lane-dense column count (multiple of 128) that divides n."""
    for cols in (2048, 1024, 512, 256, 128):
        if n % cols == 0:
            return cols
    return None


def _pick_row_tile(rows: int, cols: int):
    """Largest multiple-of-8 divisor of `rows` whose block fits the VMEM budget."""
    max_rows = max(8, _BLOCK_BYTES_BUDGET // (cols * 4))
    t = min(rows, max_rows)
    t -= t % 8
    while t >= 8:
        if rows % t == 0:
            return t
        t -= 8
    return None


def _centered_single_block(x2d: jax.Array) -> jax.Array:
    # No grid, no index_map: a single whole-array block resident in VMEM.
    return pl.pallas_call(
        _center_single_block_kernel,
        out_shape=jax.ShapeDtypeStruct(x2d.shape, x2d.dtype),
        in_specs=[pl.BlockSpec(memory_space=pltpu.MemorySpace.VMEM)],
        out_specs=pl.BlockSpec(memory_space=pltpu.MemorySpace.VMEM),
    )(x2d)


def _centered_tiled(x2d: jax.Array, row_tile: int) -> jax.Array:
    rows, cols = x2d.shape
    num_tiles = rows // row_tile

    # Pass 1: global sum (sequential accumulation into SMEM scalar output).
    total = pl.pallas_call(
        _tile_sum_kernel,
        out_shape=jax.ShapeDtypeStruct((1,), jnp.float32),
        grid=(num_tiles,),
        in_specs=[pl.BlockSpec((row_tile, cols), lambda i: (i, 0))],
        out_specs=pl.BlockSpec(memory_space=pltpu.MemorySpace.SMEM),
        compiler_params=pltpu.CompilerParams(
            dimension_semantics=("arbitrary",),
            vmem_limit_bytes=_VMEM_LIMIT_BYTES,
        ),
    )(x2d)

    # 1/N folded in as a trace-time constant; keep the scalar in f32.
    mean = (total * (1.0 / x2d.size)).astype(jnp.float32)

    # Pass 2: streaming subtract, independent tiles -> "parallel" (megacore).
    return pl.pallas_call(
        _tile_center_kernel,
        out_shape=jax.ShapeDtypeStruct(x2d.shape, x2d.dtype),
        grid=(num_tiles,),
        in_specs=[
            pl.BlockSpec(memory_space=pltpu.MemorySpace.SMEM),       # mean scalar
            pl.BlockSpec((row_tile, cols), lambda i: (i, 0)),        # x tile
        ],
        out_specs=pl.BlockSpec((row_tile, cols), lambda i: (i, 0)),
        compiler_params=pltpu.CompilerParams(
            dimension_semantics=("parallel",),
            vmem_limit_bytes=_VMEM_LIMIT_BYTES,
        ),
    )(mean, x2d)


def centered_layer(x: jax.Array) -> jax.Array:
    """Pallas equivalent of CenteredLayer.forward: X - X.mean() (global mean)."""
    orig_shape = x.shape
    n = x.size
    flat = x.reshape(-1)

    cols = _pick_cols(n)
    if cols is None:
        # Not lane-alignable without padding (padding would change the mean):
        # fall back to a single whole-array block viewed as (1, n).
        # NOTE: this fallback assumes the array fits in VMEM, which holds for
        # the small shapes this module is used with.
        out2d = _centered_single_block(flat.reshape(1, n))
        return out2d.reshape(orig_shape)

    rows = n // cols
    x2d = flat.reshape(rows, cols)

    # Small enough for one VMEM block -> zero grid overhead.
    if rows * cols * 4 <= _BLOCK_BYTES_BUDGET:
        return _centered_single_block(x2d).reshape(orig_shape)

    row_tile = _pick_row_tile(rows, cols)
    if row_tile is None:
        # Awkward row count: fall back to the single-block path.
        return _centered_single_block(x2d).reshape(orig_shape)

    return _centered_tiled(x2d, row_tile).reshape(orig_shape)


# ---------------------------------------------------------------------------
# Demo / self-test
# ---------------------------------------------------------------------------
if __name__ == "__main__":
    key = jax.random.PRNGKey(0)
    k1, k2, k3 = jax.random.split(key, 3)

    # Primary small shape implied by the module's usage: (batch=8, hidden=32).
    x = jax.random.normal(k1, (8, 32), dtype=jnp.float32)
    out = centered_layer(x)
    jax.block_until_ready(out)
    ref = x - jnp.mean(x)
    assert out.shape == x.shape and out.dtype == x.dtype
    assert jnp.allclose(out, ref, atol=1e-6), "small-case mismatch vs reference"
    assert abs(float(jnp.mean(out))) < 1e-5, "output mean not ~0"

    # Exercise the tiled two-pass path (4 MiB input -> multi-tile grid).
    xb = jax.random.normal(k2, (1024, 1024), dtype=jnp.float32)
    outb = centered_layer(xb)
    jax.block_until_ready(outb)
    refb = xb - jnp.mean(xb)
    assert jnp.allclose(outb, refb, atol=1e-5), "tiled-case mismatch vs reference"

    # Exercise the non-lane-aligned fallback (last dim not a multiple of 128).
    xc = jax.random.normal(k3, (8, 30), dtype=jnp.float32)
    outc = centered_layer(xc)
    jax.block_until_ready(outc)
    refc = xc - jnp.mean(xc)
    assert jnp.allclose(outc, refc, atol=1e-6), "fallback-case mismatch vs reference"

    print("KERNEL_OK")
</pallas_src>

<mosaic_0001>
module attributes {stable_mosaic.version = 11 : i64} {
  func.func @_center_single_block_kernel(%arg0: memref<1x256xf32, #tpu.memory_space<vmem>>, %arg1: memref<1x256xf32, #tpu.memory_space<vmem>>) attributes {dimension_semantics = [], scalar_prefetch = 0 : i64, scratch_operands = 0 : i64, tpu.core_type = #tpu.core_type<tc>} {
    %c0 = arith.constant 0 : index
    %c0_0 = arith.constant 0 : index
    %0 = vector.load %arg0[%c0, %c0_0] : memref<1x256xf32, #tpu.memory_space<vmem>>, vector<1x256xf32>
    %1 = vector.shape_cast %0 : vector<1x256xf32> to vector<1x1x256xf32>
    %cst = arith.constant dense<0.000000e+00> : vector<1xf32>
    %2 = vector.multi_reduction <add>, %1, %cst [1, 2] : vector<1x1x256xf32> to vector<1xf32>
    %3 = vector.shape_cast %2 : vector<1xf32> to vector<1x1x1xf32>
    %4 = vector.extract %3[0, 0, 0] : f32 from vector<1x1x1xf32>
    %cst_1 = arith.constant 3.906250e-03 : f32
    %5 = arith.mulf %4, %cst_1 : f32
    %6 = vector.broadcast %5 : f32 to vector<1x256xf32>
    %7 = arith.subf %0, %6 : vector<1x256xf32>
    %c0_2 = arith.constant 0 : index
    %c0_3 = arith.constant 0 : index
    %8 = vector.load %arg1[%c0_2, %c0_3] : memref<1x256xf32, #tpu.memory_space<vmem>>, vector<1x256xf32>
    tpu.vector_store %arg1[%c0_2, %c0_3], %7 {strides = array<i32>} : memref<1x256xf32, #tpu.memory_space<vmem>>, vector<1x256xf32>,
    return
  }
}

</mosaic_0001>

<bundles_post_ra>
// kernel: tpu_custom_call.1
= control target key start
LH: loop header
LB: loop body
LE: loop exit
PB: predicated region body
PF: predicated region fallthrough
CT: control target
= control target key end

     0   :  { %6 = vsyncpa [#allocation3], 0  ;;  %s141_s0 = inlined_call_operand.hbm [shape: f32[1,256], index: 0, kind: input, shape index: {}]   ;;  %s142_s1 = inlined_call_operand.hbm [shape: f32[1,256], index: 1, kind: output, shape index: {}]  }
   0x1   :  { %7 = vsyncpa [#allocation4], 0  ;;  %s13_s8 = sshll.u32 %s141_s0, 4  ;;  %s123_s9 = smov [#allocation2]   ;;  %s14_s8 = int_to_ptr.hbm [resolvable:$true] %s13_s8 }
   0x2   :  { %s15_s10 = sshll.u32 %s123_s9, 4  ;;  %s16_s10 = int_to_ptr.vmem [resolvable:$true] %s15_s10 }
   0x3   :  { %18 = dma.hbm_to_vmem [thread:$0]  %s14_s8, 32, %s16_s10, [#allocation3]  }
   0x4   :  { %119 = dma.done.wait [#allocation3], 32  }
   0x5   :  { %120 = vsyncadd [#allocation3], 4294967264  ;;  %v23_v0 = vld [vmem:[#allocation2] sm:$0x3]  ;;  %vm29_vm0 = vcmask 1040384   ;;  %v45_v13 = vlaneseq  ;;  %s124_s11 = smov [#allocation5]  }
   0x6   :  { %v25_v1 = vperm.slane %v23_v0, 0  ;;  %v26_v2 = vperm.slane %v23_v0, 1  ;;  %s55_s12 = sshll.u32 %s124_s11, 4  ;;  %s57_s16 = sshll.u32 %s142_s1, 4  ;;  %s56_s12 = int_to_ptr.vmem [resolvable:$true] %s55_s12  ;;  %s58_s16 = int_to_ptr.hbm [resolvable:$true] %s57_s16 }
   0x7   :  { %vm47_vm1 = vcmp.lt.s32.totalorder %v45_v13, 256 }
   0x8   :  { %v30_v3 = vsel %vm29_vm0, %v25_v1, 0.0  ;;  %v31_v4 = vsel %vm29_vm0, %v26_v2, 0.0 }
   0x9   :  { %v32_v5 = vadd.f32 %v31_v4, %v30_v3 }
   0xb   :  { %33 = vadd.xlane.f32.xlu0 %v32_v5 }
  0x7e   :  { %v34_v6 = vpop.xlane.xlu0 %33 }
  0x7f   :  { %v35_v7 = vrot.slane %v34_v6, 4 }
  0x81   :  { %v36_v8 = vadd.f32 %v35_v7, %v34_v6 }
  0x83   :  { %v37_v9 = vrot.slane %v36_v8, 2 }
  0x85   :  { %v38_v10 = vadd.f32 %v37_v9, %v36_v8 }
  0x87   :  { %v39_v11 = vrot.slane %v38_v10, 1 }
  0x89   :  { %v40_v12 = vadd.f32 %v39_v11, %v38_v10 }
  0x8b   :  { %67 = vpush %v40_v12 }
  0xbc   :  { %s68_s0 = spop %67 }
  0xbd   :  { %s42_s13 = smul.f32 0.00390625, %s68_s0 }
  0xbf   :  { %v43_v14 = vstv %s42_s13 }
  0xc0   :  { %v44_v15 = vsub.f32 %v23_v0, %v43_v14 }
  0xc2   :  { %49 = vst.msk [vmem:[#allocation5] sm:$0x3] %vm47_vm1, %v44_v15 }
  0xc3   :  { %60 = dma.vmem_to_hbm [thread:$0]  %s56_s12, 32, %s58_s16, [#allocation4]  }
  0xc4   :  { %121 = dma.done.wait [#allocation4], 32  }
  0xc5   :  { %122 = vsyncadd [#allocation4], 4294967264 }
  0xc6   :  { %65 = vsyncpa [#allocation3], 1 }
  0xc7   :  { %66 = vsyncpa [#allocation4], 1 }

</bundles_post_ra>
